<compile_context>
chip_gen: v6e
topology: v6e:2x2x1
jax: 0.10.0
libtpu: 0.0.40
codegen_flags: <defaults>
</compile_context>

<pallas_src>
import jax
import jax.numpy as jnp
from jax.experimental import pallas as pl
from jax.experimental.pallas import tpu as pltpu


def make_coupling_kernel(num_layers, reverse):
    """Build the fused coupling kernel.

    Ref order: x1, x2, (w0, b0, ..., w_{L-1}, b_{L-1}), y2_out.
    Computes m(x1) = MLP(x1) with ReLU between layers (none after the last),
    then y2 = x2 +/- m(x1). The +/- is a static Python branch (constant-folded).
    """
    def kernel(*refs):
        x1_ref, x2_ref = refs[0], refs[1]
        wb_refs = refs[2:2 + 2 * num_layers]
        y2_ref = refs[2 + 2 * num_layers]

        h = x1_ref[...].astype(jnp.float32)
        for l in range(num_layers):
            w = wb_refs[2 * l][...]                 # (f_in, f_out), resident
            b = wb_refs[2 * l + 1][...]             # (1, f_out), broadcasts
            h = jnp.dot(h, w, preferred_element_type=jnp.float32)
            h = h + b.astype(jnp.float32)
            if l < num_layers - 1:
                h = jnp.maximum(h, 0.0)             # ReLU on hidden layers only

        x2 = x2_ref[...].astype(jnp.float32)
        y2 = x2 - h if reverse else x2 + h          # static sign
        y2_ref[...] = y2.astype(y2_ref.dtype)       # single final cast

    return kernel


def additive_coupling_forward(x, log_det_J, params, mask_config, reverse=False):
    """Pallas implementation of AdditiveCoupling.forward.

    params: list of (W, b) with W shape (f_in, f_out), b shape (f_out,).
    """
    B, D = x.shape
    half = D // 2

    # Glue: even/odd de-interleave (plain JAX, cheap at these sizes).
    # TODO(synk): keep the whole NICE stack in de-interleaved (x1, x2) layout so
    # consecutive coupling layers skip this strided gather / re-interleave pair.
    x1 = x[:, mask_config::2]          # (B, half) -- units passed through
    x2 = x[:, 1 - mask_config::2]      # (B, half) -- units being transformed

    num_layers = len(params)
    kernel = make_coupling_kernel(num_layers, bool(reverse))

    # Batch tile: big enough to fill the MXU (256 rows) when B is large; if the
    # whole batch fits one tile, use it (block == full dims is always legal).
    TB = B if B <= 256 else 256
    grid = (pl.cdiv(B, TB),)

    flat_params = []
    wb_specs = []
    for w, b in params:
        b2 = b.reshape(1, -1)                       # keep biases 2-D for VMEM
        flat_params += [w, b2]
        # Constant index_map -> weights/biases stay resident across grid steps.
        wb_specs += [pl.BlockSpec(w.shape, lambda i: (0, 0)),
                     pl.BlockSpec(b2.shape, lambda i: (0, 0))]

    act_spec = pl.BlockSpec((TB, half), lambda i: (i, 0))

    # Explicit VMEM budget: double-buffered activation tiles + resident params
    # + f32 hidden activations, with headroom.
    itemsize = x.dtype.itemsize
    max_width = max(w.shape[1] for w, _ in params)
    act_bytes = 2 * 3 * TB * half * itemsize                     # x1, x2, y2 (x2 bufs)
    par_bytes = 2 * sum(w.size * w.dtype.itemsize
                        + b.size * b.dtype.itemsize for w, b in params)
    hid_bytes = 2 * TB * max_width * 4
    vmem_limit = int(1.25 * (act_bytes + par_bytes + hid_bytes))
    vmem_limit = min(max(vmem_limit, 32 << 20), 100 << 20)

    y2 = pl.pallas_call(
        kernel,
        out_shape=jax.ShapeDtypeStruct((B, half), x.dtype),
        grid=grid,
        in_specs=[act_spec, act_spec] + wb_specs,
        out_specs=act_spec,
        compiler_params=pltpu.CompilerParams(
            dimension_semantics=("parallel",),
            vmem_limit_bytes=vmem_limit),
    )(x1, x2, *flat_params)

    # y1 is the identity pass-through -- no kernel output needed.
    y1 = x1

    # Glue: re-interleave, matching torch.stack(dim=2).view(-1, D).
    ordered = (y1, y2) if mask_config == 0 else (y2, y1)
    y = jnp.stack(ordered, axis=2).reshape(-1, D)
    return y, log_det_J


def init_params(key, in_out_dim, mid_dim, hidden):
    """Deterministic init mirroring nn.Linear (uniform +-1/sqrt(fan_in)).

    Layer stack: (hidden-1) x [Linear -> ReLU] then final Linear(mid, half).
    Weights stored transposed, shape (f_in, f_out), for right-multiplication.
    """
    half = in_out_dim // 2
    dims = []
    layer_size = half
    for _ in range(1, hidden):
        dims.append((layer_size, mid_dim))
        layer_size = mid_dim
    dims.append((mid_dim, half))

    params = []
    for (f_in, f_out) in dims:
        key, kw, kb = jax.random.split(key, 3)
        bound = 1.0 / jnp.sqrt(jnp.float32(f_in))
        w = jax.random.uniform(kw, (f_in, f_out), jnp.float32, -bound, bound)
        b = jax.random.uniform(kb, (f_out,), jnp.float32, -bound, bound)
        params.append((w, b))
    return params


def reference_forward(x, log_det_J, params, mask_config, reverse=False):
    """Pure-JAX reference for validation."""
    x1 = x[:, mask_config::2]
    x2 = x[:, 1 - mask_config::2]
    h = x1
    for i, (w, b) in enumerate(params):
        h = h @ w + b
        if i < len(params) - 1:
            h = jnp.maximum(h, 0.0)
    y2 = x2 - h if reverse else x2 + h
    ordered = (x1, y2) if mask_config == 0 else (y2, x1)
    y = jnp.stack(ordered, axis=2).reshape(-1, x.shape[1])
    return y, log_det_J


if __name__ == "__main__":
    # Small shapes consistent with the module: batch=8, in_out_dim=64,
    # mid_dim=32, hidden=3 (i.e. 2 hidden Linear+ReLU layers + final Linear).
    B, in_out_dim, mid_dim, hidden, mask_config = 8, 64, 32, 3, 1

    key = jax.random.PRNGKey(0)
    kx, kp = jax.random.split(key)
    x = jax.random.normal(kx, (B, in_out_dim), jnp.float32)
    log_det_J = jnp.zeros((), jnp.float32)
    params = init_params(kp, in_out_dim, mid_dim, hidden)

    y, ldj = additive_coupling_forward(x, log_det_J, params, mask_config,
                                       reverse=False)
    y = jax.block_until_ready(y)
    ldj = jax.block_until_ready(ldj)

    y_ref, ldj_ref = reference_forward(x, log_det_J, params, mask_config,
                                       reverse=False)
    assert y.shape == (B, in_out_dim)
    assert jnp.allclose(y, y_ref, atol=1e-5, rtol=1e-5)
    assert jnp.allclose(ldj, ldj_ref)

    # Also exercise reverse=True path once (inverse of forward).
    y_inv, _ = additive_coupling_forward(y, log_det_J, params, mask_config,
                                         reverse=True)
    y_inv = jax.block_until_ready(y_inv)
    assert jnp.allclose(y_inv, x, atol=1e-4, rtol=1e-4)

    print("KERNEL_OK")
</pallas_src>

<mosaic_0001>
module attributes {stable_mosaic.version = 11 : i64} {
  func.func @kernel(%arg0: i32, %arg1: memref<8x32xf32, #tpu.memory_space<vmem>>, %arg2: memref<8x32xf32, #tpu.memory_space<vmem>>, %arg3: memref<32x32xf32, #tpu.memory_space<vmem>>, %arg4: memref<1x32xf32, #tpu.memory_space<vmem>>, %arg5: memref<32x32xf32, #tpu.memory_space<vmem>>, %arg6: memref<1x32xf32, #tpu.memory_space<vmem>>, %arg7: memref<32x32xf32, #tpu.memory_space<vmem>>, %arg8: memref<1x32xf32, #tpu.memory_space<vmem>>, %arg9: memref<8x32xf32, #tpu.memory_space<vmem>>) attributes {dimension_semantics = [#tpu.dimension_semantics<parallel>], iteration_bounds = array<i64: 1>, scalar_prefetch = 0 : i64, scratch_operands = 0 : i64, tpu.core_type = #tpu.core_type<tc>, window_params = [{transform_indices = @transform_0, window_bounds = array<i64: 8, 32>}, {transform_indices = @transform_1, window_bounds = array<i64: 8, 32>}, {pipeline_mode = #tpu.pipeline_mode<synchronous>, transform_indices = @transform_2, window_bounds = array<i64: 32, 32>}, {pipeline_mode = #tpu.pipeline_mode<synchronous>, transform_indices = @transform_3, window_bounds = array<i64: 1, 32>}, {pipeline_mode = #tpu.pipeline_mode<synchronous>, transform_indices = @transform_4, window_bounds = array<i64: 32, 32>}, {pipeline_mode = #tpu.pipeline_mode<synchronous>, transform_indices = @transform_5, window_bounds = array<i64: 1, 32>}, {pipeline_mode = #tpu.pipeline_mode<synchronous>, transform_indices = @transform_6, window_bounds = array<i64: 32, 32>}, {pipeline_mode = #tpu.pipeline_mode<synchronous>, transform_indices = @transform_7, window_bounds = array<i64: 1, 32>}, {transform_indices = @transform_8, window_bounds = array<i64: 8, 32>}]} {
    %c0 = arith.constant 0 : index
    %c0_0 = arith.constant 0 : index
    %0 = vector.load %arg1[%c0, %c0_0] : memref<8x32xf32, #tpu.memory_space<vmem>>, vector<8x32xf32>
    %c0_1 = arith.constant 0 : index
    %c0_2 = arith.constant 0 : index
    %1 = vector.load %arg3[%c0_1, %c0_2] : memref<32x32xf32, #tpu.memory_space<vmem>>, vector<32x32xf32>
    %c0_3 = arith.constant 0 : index
    %c0_4 = arith.constant 0 : index
    %2 = vector.load %arg4[%c0_3, %c0_4] : memref<1x32xf32, #tpu.memory_space<vmem>>, vector<1x32xf32>
    %cst = arith.constant dense<0.000000e+00> : vector<8x32xf32>
    %3 = tpu.matmul %0, %1, %cst {dimension_numbers = #tpu.dot_dimension_numbers<[1], [0], [0], [1], [0, 0, 1, 1], [], []>} : vector<8x32xf32>, vector<32x32xf32>, vector<8x32xf32> -> vector<8x32xf32>
    %4 = vector.broadcast %2 : vector<1x32xf32> to vector<8x32xf32>
    %5 = arith.addf %3, %4 : vector<8x32xf32>
    %cst_5 = arith.constant 0.000000e+00 : f32
    %6 = vector.broadcast %cst_5 : f32 to vector<8x32xf32>
    %7 = arith.maximumf %5, %6 : vector<8x32xf32>
    %c0_6 = arith.constant 0 : index
    %c0_7 = arith.constant 0 : index
    %8 = vector.load %arg5[%c0_6, %c0_7] : memref<32x32xf32, #tpu.memory_space<vmem>>, vector<32x32xf32>
    %c0_8 = arith.constant 0 : index
    %c0_9 = arith.constant 0 : index
    %9 = vector.load %arg6[%c0_8, %c0_9] : memref<1x32xf32, #tpu.memory_space<vmem>>, vector<1x32xf32>
    %cst_10 = arith.constant dense<0.000000e+00> : vector<8x32xf32>
    %10 = tpu.matmul %7, %8, %cst_10 {dimension_numbers = #tpu.dot_dimension_numbers<[1], [0], [0], [1], [0, 0, 1, 1], [], []>} : vector<8x32xf32>, vector<32x32xf32>, vector<8x32xf32> -> vector<8x32xf32>
    %11 = vector.broadcast %9 : vector<1x32xf32> to vector<8x32xf32>
    %12 = arith.addf %10, %11 : vector<8x32xf32>
    %cst_11 = arith.constant 0.000000e+00 : f32
    %13 = vector.broadcast %cst_11 : f32 to vector<8x32xf32>
    %14 = arith.maximumf %12, %13 : vector<8x32xf32>
    %c0_12 = arith.constant 0 : index
    %c0_13 = arith.constant 0 : index
    %15 = vector.load %arg7[%c0_12, %c0_13] : memref<32x32xf32, #tpu.memory_space<vmem>>, vector<32x32xf32>
    %c0_14 = arith.constant 0 : index
    %c0_15 = arith.constant 0 : index
    %16 = vector.load %arg8[%c0_14, %c0_15] : memref<1x32xf32, #tpu.memory_space<vmem>>, vector<1x32xf32>
    %cst_16 = arith.constant dense<0.000000e+00> : vector<8x32xf32>
    %17 = tpu.matmul %14, %15, %cst_16 {dimension_numbers = #tpu.dot_dimension_numbers<[1], [0], [0], [1], [0, 0, 1, 1], [], []>} : vector<8x32xf32>, vector<32x32xf32>, vector<8x32xf32> -> vector<8x32xf32>
    %18 = vector.broadcast %16 : vector<1x32xf32> to vector<8x32xf32>
    %19 = arith.addf %17, %18 : vector<8x32xf32>
    %c0_17 = arith.constant 0 : index
    %c0_18 = arith.constant 0 : index
    %20 = vector.load %arg2[%c0_17, %c0_18] : memref<8x32xf32, #tpu.memory_space<vmem>>, vector<8x32xf32>
    %21 = arith.addf %20, %19 : vector<8x32xf32>
    %c0_19 = arith.constant 0 : index
    %c0_20 = arith.constant 0 : index
    %22 = vector.load %arg9[%c0_19, %c0_20] : memref<8x32xf32, #tpu.memory_space<vmem>>, vector<8x32xf32>
    tpu.vector_store %arg9[%c0_19, %c0_20], %21 {strides = array<i32>} : memref<8x32xf32, #tpu.memory_space<vmem>>, vector<8x32xf32>,
    return
  }
  func.func @transform_0(%arg0: i32) -> (i32, i32) {
    %c0_i32 = arith.constant 0 : i32
    %c0_i32_0 = arith.constant 0 : i32
    return %arg0, %c0_i32 : i32, i32
  }
  func.func @transform_1(%arg0: i32) -> (i32, i32) {
    %c0_i32 = arith.constant 0 : i32
    %c0_i32_0 = arith.constant 0 : i32
    return %arg0, %c0_i32 : i32, i32
  }
  func.func @transform_2(%arg0: i32) -> (i32, i32) {
    %c0_i32 = arith.constant 0 : i32
    %c0_i32_0 = arith.constant 0 : i32
    %c0_i32_1 = arith.constant 0 : i32
    return %c0_i32, %c0_i32_0 : i32, i32
  }
  func.func @transform_3(%arg0: i32) -> (i32, i32) {
    %c0_i32 = arith.constant 0 : i32
    %c0_i32_0 = arith.constant 0 : i32
    %c0_i32_1 = arith.constant 0 : i32
    return %c0_i32, %c0_i32_0 : i32, i32
  }
  func.func @transform_4(%arg0: i32) -> (i32, i32) {
    %c0_i32 = arith.constant 0 : i32
    %c0_i32_0 = arith.constant 0 : i32
    %c0_i32_1 = arith.constant 0 : i32
    return %c0_i32, %c0_i32_0 : i32, i32
  }
  func.func @transform_5(%arg0: i32) -> (i32, i32) {
    %c0_i32 = arith.constant 0 : i32
    %c0_i32_0 = arith.constant 0 : i32
    %c0_i32_1 = arith.constant 0 : i32
    return %c0_i32, %c0_i32_0 : i32, i32
  }
  func.func @transform_6(%arg0: i32) -> (i32, i32) {
    %c0_i32 = arith.constant 0 : i32
    %c0_i32_0 = arith.constant 0 : i32
    %c0_i32_1 = arith.constant 0 : i32
    return %c0_i32, %c0_i32_0 : i32, i32
  }
  func.func @transform_7(%arg0: i32) -> (i32, i32) {
    %c0_i32 = arith.constant 0 : i32
    %c0_i32_0 = arith.constant 0 : i32
    %c0_i32_1 = arith.constant 0 : i32
    return %c0_i32, %c0_i32_0 : i32, i32
  }
  func.func @transform_8(%arg0: i32) -> (i32, i32) {
    %c0_i32 = arith.constant 0 : i32
    %c0_i32_0 = arith.constant 0 : i32
    return %arg0, %c0_i32 : i32, i32
  }
}

</mosaic_0001>

<bundles_post_ra>
// kernel: tpu_custom_call.1
= control target key start
LH: loop header
LB: loop body
LE: loop exit
PB: predicated region body
PF: predicated region fallthrough
CT: control target
= control target key end

     0   :  { %13 = vsyncpa [#allocation3], 0  ;;  %s660_s0 = inlined_call_operand.hbm [shape: f32[8,32], index: 0, kind: input, shape index: {}]   ;;  %s661_s1 = inlined_call_operand.hbm [shape: f32[8,32], index: 1, kind: input, shape index: {}]   ;;  %s662_s2 = inlined_call_operand.hbm [shape: f32[32,32], index: 2, kind: input, shape index: {}]   ;;  %s663_s3 = inlined_call_operand.vmem [shape: f32[1,32], index: 3, kind: input, shape index: {}]   ;;  %s664_s4 = inlined_call_operand.hbm [shape: f32[32,32], index: 4, kind: input, shape index: {}]   ;;  %s665_s5 = inlined_call_operand.vmem [shape: f32[1,32], index: 5, kind: input, shape index: {}]   ;;  %s666_s6 = inlined_call_operand.hbm [shape: f32[32,32], index: 6, kind: input, shape index: {}]   ;;  %s667_s7 = inlined_call_operand.vmem [shape: f32[1,32], index: 7, kind: input, shape index: {}]   ;;  %s668_s8 = inlined_call_operand.hbm [shape: f32[8,32], index: 8, kind: output, shape index: {}]  }
   0x1   :  { %14 = vsyncpa [#allocation6], 0 }
   0x2   :  { %15 = vsyncpa [#allocation9], 0 }
   0x3   :  { %16 = vsyncpa [#allocation4], 0  ;;  %s562_s27 = smov [#allocation5]  }
   0x4   :  { %s33_s28 = sshll.u32 %s562_s27, 4  ;;  %s34_s28 = int_to_ptr.vmem [resolvable:$true] %s33_s28 }
   0x5   :  { %s442_s29 = scalar_lea.vmem %s34_s28, 128  ;;  %p447_p1 = scmp.lt.s32.totalorder %s34_s28, %s34_s28 }
   0x6   :  { %p443_p0 = scmp.ne.s32.totalorder %s34_s28, %s442_s29  ;;  %p448_p2 = scmp.lt.s32.totalorder %s442_s29, %s442_s29 }
   0x8   :  { %p449_p3 = por %p448_p2, %p447_p1 }
   0xa   :  { %p450_p4 = pnand %p449_p3, %p443_p0 }
   0xc   :  { %453 = shalt.err (!%p450_p4)
}
   0xd   :  { %36 = dma.hbm_to_vmem [thread:$0]  %s661_s1, 128, %s34_s28, [#allocation6]  }
   0xe   :  { %s563_s10 = smov [#allocation8]   ;;  %s564_s12 = smov [#allocation2]  }
   0xf   :  { %s56_s11 = sshll.u32 %s563_s10, 4  ;;  %s23_s13 = sshll.u32 %s564_s12, 4  ;;  %s57_s11 = int_to_ptr.vmem [resolvable:$true] %s56_s11  ;;  %s24_s13 = int_to_ptr.vmem [resolvable:$true] %s23_s13 }
  0x10   :  { %s462_s14 = scalar_lea.vmem %s57_s11, 512  ;;  %p467_p6 = scmp.lt.s32.totalorder %s57_s11, %s57_s11 }
  0x11   :  { %p463_p5 = scmp.ne.s32.totalorder %s57_s11, %s462_s14  ;;  %p468_p7 = scmp.lt.s32.totalorder %s462_s14, %s462_s14 }
  0x13   :  { %p469_p8 = por %p468_p7, %p467_p6 }
  0x15   :  { %p470_p9 = pnand %p469_p8, %p463_p5 }
  0x17   :  { %473 = shalt.err (!%p470_p9)
}
  0x18   :  { %s565_s15 = smov 128   ;;  %s566_s16 = smov 8  }
  0x19   :  { %62 = dma.hbm_to_vmem [thread:$0]  %s664_s4, 512, %s57_s11, [#allocation9], %s565_s15, %s565_s15, %s566_s16  }
  0x1a   :  { %s482_s1 = scalar_lea.vmem %s24_s13, 128  ;;  %p487_p11 = scmp.lt.s32.totalorder %s24_s13, %s24_s13 }
  0x1b   :  { %p483_p10 = scmp.ne.s32.totalorder %s24_s13, %s482_s1  ;;  %p488_p12 = scmp.lt.s32.totalorder %s482_s1, %s482_s1 }
  0x1d   :  { %p489_p13 = por %p488_p12, %p487_p11 }
  0x1f   :  { %p490_p0 = pnand %p489_p13, %p483_p10 }
  0x21   :  { %493 = shalt.err (!%p490_p0)
}
  0x22   :  { %26 = dma.hbm_to_vmem [thread:$0]  %s660_s0, 128, %s24_s13, [#allocation3]  }
  0x23   :  { %s567_s21 = smov [#allocation7]   ;;  %s568_s23 = smov [#allocation10]  }
  0x24   :  { %s42_s22 = sshll.u32 %s567_s21, 4  ;;  %s70_s24 = sshll.u32 %s568_s23, 4  ;;  %s43_s22 = int_to_ptr.vmem [resolvable:$true] %s42_s22  ;;  %s71_s24 = int_to_ptr.vmem [resolvable:$true] %s70_s24 }
  0x25   :  { %s502_s25 = scalar_lea.vmem %s43_s22, 512  ;;  %p507_p2 = scmp.lt.s32.totalorder %s43_s22, %s43_s22 }
  0x26   :  { %p503_p1 = scmp.ne.s32.totalorder %s43_s22, %s502_s25  ;;  %p508_p3 = scmp.lt.s32.totalorder %s502_s25, %s502_s25 }
  0x28   :  { %p509_p4 = por %p508_p3, %p507_p2 }
  0x2a   :  { %p510_p5 = pnand %p509_p4, %p503_p1 }
  0x2c   :  { %513 = shalt.err (!%p510_p5)
}
  0x2d   :  { %48 = dma.hbm_to_vmem [thread:$0]  %s662_s2, 512, %s43_s22, [#allocation6], %s565_s15, %s565_s15, %s566_s16  }
  0x2e   :  { %s522_s0 = scalar_lea.vmem %s71_s24, 512  ;;  %p527_p7 = scmp.lt.s32.totalorder %s71_s24, %s71_s24 }
  0x2f   :  { %p523_p6 = scmp.ne.s32.totalorder %s71_s24, %s522_s0  ;;  %p528_p8 = scmp.lt.s32.totalorder %s522_s0, %s522_s0 }
  0x31   :  { %p529_p9 = por %p528_p8, %p527_p7 }
  0x33   :  { %p530_p10 = pnand %p529_p9, %p523_p6 }
  0x35   :  { %533 = shalt.err (!%p530_p10)
}
  0x36   :  { %76 = dma.hbm_to_vmem [thread:$0]  %s666_s6, 512, %s71_s24, [#allocation9], %s565_s15, %s565_s15, %s566_s16  }
  0x37   :  { %554 = dma.done.wait [#allocation3], 128  }
  0x38   :  { %555 = vsyncadd [#allocation3], 4294967168 }
  0x39   :  { %556 = dma.done.wait [#allocation6], 640  }
  0x3a   :  { %557 = vsyncadd [#allocation6], 4294966656 }
  0x3b   :  { %558 = dma.done.wait [#allocation9], 1024  }
  0x3c   :  { %559 = vsyncadd [#allocation9], 4294966272  ;;  %v569_v0 = vmov 0.0   ;;  %vm570_vm0 = vmmov 0   ;;  %v98_v1 = vld [vmem:[#allocation7 + $0x18] sm:$0xff]  ;;  %v97_v2 = vld [vmem:[#allocation7 + $0x10] sm:$0xff] }
  0x3d   :  { %391 = vmatprep.subr.mxu0 %v569_v0  ;;  %399 = vmatprep.mubr.msk.f32.mxu0 %vm570_vm0, %v569_v0  ;;  %v184_v3 = vld [vmem:[#allocation8 + $0x18] sm:$0xff]  ;;  %v96_v4 = vld [vmem:[#allocation7 + $0x8] sm:$0xff]  ;;  %v95_v5 = vld [vmem:[#allocation7] sm:$0xff]  ;;  %vm106_vm1 = vcmask 261120   ;;  %s571_s10 = smov [#allocation11]  }
  0x3e   :  { %402 = vmatprep.subr.mxu1 %v569_v0  ;;  %410 = vmatprep.mubr.msk.f32.mxu1 %vm570_vm0, %v569_v0  ;;  %v94_v6 = vld [vmem:[#allocation2] sm:$0xff]  ;;  %v182_v8 = vld [vmem:[#allocation8 + $0x8] sm:$0xff]  ;;  %v181_v9 = vld [vmem:[#allocation8] sm:$0xff]  ;;  %s359_s11 = sshll.u32 %s571_s10, 4  ;;  %s360_s11 = int_to_ptr.vmem [resolvable:$true] %s359_s11 }
  0x3f   :  { %392 = vmatpush3.msra.mxu0 %v98_v1  ;;  %403 = vmatpush3.msra.mxu1 %v184_v3  ;;  %v183_v7 = vld [vmem:[#allocation8 + $0x10] sm:$0xff]  ;;  %v269_v10 = vld [vmem:[#allocation10 + $0x18] sm:$0xff]  ;;  %v267_v17 = vld [vmem:[#allocation10 + $0x8] sm:$0xff]  ;;  %p539_p12 = scmp.lt.s32.totalorder %s360_s11, %s360_s11 }
  0x40   :  { %393 = vmatprep.subr.mxu0 %v569_v0  ;;  %404 = vmatprep.subr.mxu1 %v569_v0  ;;  %v370_v11 = vld [vmem:[%s663_s3] ss:$0 sm:$0xff]  ;;  %v266_v18 = vld [vmem:[#allocation10] sm:$0xff]  ;;  %v350_v26 = vld [vmem:[#allocation5] sm:$0xff] }
  0x41   :  { %394 = vmatpush3.msra.mxu0 %v97_v2  ;;  %405 = vmatpush3.msra.mxu1 %v183_v7  ;;  %v268_v16 = vld [vmem:[#allocation10 + $0x10] sm:$0xff] }
  0x42   :  { %395 = vmatprep.subr.mxu0 %v569_v0  ;;  %406 = vmatprep.subr.mxu1 %v569_v0  ;;  %v372_v19 = vld [vmem:[%s665_s5] ss:$0 sm:$0xff]  ;;  %s534_s5 = scalar_lea.vmem %s360_s11, 128 }
  0x43   :  { %396 = vmatpush3.msra.mxu0 %v96_v4  ;;  %407 = vmatpush3.msra.mxu1 %v182_v8  ;;  %v374_v24 = vld [vmem:[%s667_s7] ss:$0 sm:$0xff]  ;;  %p535_p11 = scmp.ne.s32.totalorder %s360_s11, %s534_s5  ;;  %p540_p13 = scmp.lt.s32.totalorder %s534_s5, %s534_s5 }
  0x44   :  { %397 = vmatprep.subr.mxu0 %v569_v0  ;;  %408 = vmatprep.subr.mxu1 %v569_v0 }
  0x45   :  { %398 = vmatpush3.msra.mxu0 %v95_v5  ;;  %409 = vmatpush3.msra.mxu1 %v181_v9  ;;  %p541_p0 = por %p540_p13, %p539_p12 }
  0x46   :  { %400 = vmatmul.mubr.msk.f32.vlgmr.msra.gmra.mxu0 %vm106_vm1, %v94_v6  ;;  %413 = vmatprep.subr.mxu0 %v569_v0 }
  0x47   :  { %421 = vmatprep.mubr.msk.f32.mxu0 %vm570_vm0, %v569_v0  ;;  %414 = vmatpush3.msra.mxu0 %v269_v10  ;;  %p542_p1 = pnand %p541_p0, %p535_p11 }
  0x48   :  { %415 = vmatprep.subr.mxu0 %v569_v0 }
  0x49   :  { %416 = vmatpush3.msra.mxu0 %v268_v16 }
  0x4a   :  { %417 = vmatprep.subr.mxu0 %v569_v0 }
  0x4b   :  { %418 = vmatpush3.msra.mxu0 %v267_v17 }
  0x4c   :  { %419 = vmatprep.subr.mxu0 %v569_v0 }
  0x4d   :  { %420 = vmatpush3.msra.mxu0 %v266_v18 }
 0x106   :  { %v176_v12 = vpop.f32.mrf.mxu0 }
 0x107   :  { %v177_v13 = vadd.f32 %v370_v11, %v176_v12 }
 0x108   :  { %v401_v14 = vpop.f32.mrf.mxu0 }
 0x109   :  { %v180_v15 = vmax.f32 %v177_v13, 0.0 }
 0x10b   :  { %411 = vmatmul.mubr.msk.f32.vlgmr.msra.gmra.mxu1 %vm106_vm1, %v180_v15 }
 0x1cb   :  { %v261_v20 = vpop.f32.mrf.mxu1 }
 0x1cc   :  { %v262_v21 = vadd.f32 %v372_v19, %v261_v20 }
 0x1cd   :  { %v412_v22 = vpop.f32.mrf.mxu1 }
 0x1ce   :  { %v265_v23 = vmax.f32 %v262_v21, 0.0 }
 0x1d0   :  { %422 = vmatmul.mubr.msk.f32.vlgmr.msra.gmra.mxu0 %vm106_vm1, %v265_v23 }
 0x290   :  { %v346_v25 = vpop.f32.mrf.mxu0 }
 0x291   :  { %v347_v27 = vadd.f32 %v374_v24, %v346_v25 }
 0x292   :  { %v423_v28 = vpop.f32.mrf.mxu0 }
 0x293   :  { %v351_v29 = vadd.f32 %v350_v26, %v347_v27 }
 0x295   :  { %352 = vst.msk [vmem:[#allocation11] sm:$0xff] %vm106_vm1, %v351_v29 }
 0x296   :  { %545 = shalt.err (!%p542_p1)
}
 0x297   :  { %362 = dma.vmem_to_hbm [thread:$0]  %s360_s11, 128, %s668_s8, [#allocation4]  }
 0x298   :  { %560 = dma.done.wait [#allocation4], 128  }
 0x299   :  { %561 = vsyncadd [#allocation4], 4294967168 }
 0x29a   :  { %366 = vsyncpa [#allocation3], 1 }
 0x29b   :  { %367 = vsyncpa [#allocation6], 1 }
 0x29c   :  { %368 = vsyncpa [#allocation9], 1 }
 0x29d   :  { %369 = vsyncpa [#allocation4], 1 }

</bundles_post_ra>
